<compile_context>
chip_gen: v7x
topology: tpu7x:2x2x1
jax: 0.10.0
libtpu: 0.0.40
codegen_flags: <defaults>
</compile_context>

<pallas_src>
import jax
import jax.numpy as jnp
from jax.experimental import pallas as pl
from jax.experimental.pallas import tpu as pltpu

_MIB = 1024 * 1024


def _round_up(n: int, m: int) -> int:
    return ((n + m - 1) // m) * m


def _vmem_capacity_bytes() -> int:
    try:
        info = pltpu.get_tpu_info()
        cap = int(getattr(info, "vmem_capacity_bytes", 0))
        if cap > 0:
            return cap
    except Exception:
        pass
    return 64 * _MIB  # conservative default (v7x per-TensorCore)


def _num_tensorcores() -> int:
    try:
        dev = jax.devices()[0]
        for attr in ("num_cores", "core_count"):
            v = getattr(dev, attr, None)
            if isinstance(v, int) and v > 0:
                return v
    except Exception:
        pass
    return 1


# ----------------------------------------------------------------------------
# Kernels (no tanh, no concat, no transpose in the body — just MXU + epilogue)
# ----------------------------------------------------------------------------
def _liquid_ode_kernel(lhs_ref, x_ref, w_hh_ref, w_ih_ref, neg_h_ref, bias_ref,
                       out_ref):
    """out = tanh(h) @ Whh_t_scaled + x @ Wih_t_scaled + bias*inv_tau - h*inv_tau."""
    acc = jnp.dot(lhs_ref[...], w_hh_ref[...].astype(jnp.float32),
                  preferred_element_type=jnp.float32)
    acc = acc + jnp.dot(x_ref[...], w_ih_ref[...].astype(jnp.float32),
                        preferred_element_type=jnp.float32)
    out_ref[...] = (acc + neg_h_ref[...] + bias_ref[...]).astype(out_ref.dtype)


def _liquid_ode_kernel_no_input(lhs_ref, w_hh_ref, neg_h_ref, bias_ref,
                                out_ref):
    acc = jnp.dot(lhs_ref[...], w_hh_ref[...].astype(jnp.float32),
                  preferred_element_type=jnp.float32)
    out_ref[...] = (acc + neg_h_ref[...] + bias_ref[...]).astype(out_ref.dtype)


# ----------------------------------------------------------------------------
# One-time parameter preparation (hoist off the per-step critical path)
# ----------------------------------------------------------------------------
def prepare_params(params, *, weight_dtype=jnp.bfloat16):
    """Transpose, pad, fold 1/tau into, and cast the weights ONCE.

    Returns a dict that liquid_ode_func consumes directly. Call this once and
    reuse the result for every ODE step — rebuilding the weight slab per call
    is pure extra HBM traffic for this bandwidth-bound kernel.
    """
    w_hh = jnp.asarray(params["W_hh"], jnp.float32)
    w_ih = jnp.asarray(params["W_ih"], jnp.float32)
    bias = jnp.asarray(params["bias"], jnp.float32)
    tau = jnp.asarray(params["tau"], jnp.float32)

    H = w_hh.shape[0]
    H_pad = _round_up(max(H, 128), 128)
    inv_tau = 1.0 / tau

    def prep_w(w):
        wt = w.T * inv_tau[None, :]                 # fold 1/tau into columns
        wt = jnp.pad(wt, ((0, H_pad - H), (0, H_pad - H)))
        return wt.astype(weight_dtype)

    bias_scaled = jnp.pad(bias * inv_tau, (0, H_pad - H)).reshape(1, H_pad)

    return {
        "_prepared": True,
        "hidden_size": H,
        "hidden_pad": H_pad,
        "weight_dtype": jnp.dtype(weight_dtype),
        "w_hh_t": prep_w(w_hh),      # [H_pad, H_pad] weight_dtype, pre-scaled
        "w_ih_t": prep_w(w_ih),      # [H_pad, H_pad] weight_dtype, pre-scaled
        "bias_scaled": bias_scaled,  # [1, H_pad] f32, pre-scaled
        "inv_tau": inv_tau,          # [H] f32 (for the -h/tau term)
    }


# ----------------------------------------------------------------------------
# Wrapper
# ----------------------------------------------------------------------------
def liquid_ode_func(t, h, params, x=None, *, weight_dtype=jnp.bfloat16):
    """JAX/Pallas equivalent of LiquidODEFunc.forward(t, h) with self.input == x.

    Args:
      t: scalar time (unused; kept for API parity).
      h: [batch, hidden] hidden state (any float dtype; compute is f32).
      params: either the raw dict {'W_hh','W_ih','bias','tau'} or the output of
        prepare_params() (strongly preferred for repeated calls).
      x: optional [batch, hidden] input (self.input). None -> input_effect = 0.
      weight_dtype: matmul weight dtype used only when raw params are passed
        (ignored if params is already prepared). Activations stay f32.
    Returns:
      dh/dt with the same shape and dtype as the incoming h.
    """
    del t  # unused by the reference forward pass
    if not (isinstance(params, dict) and params.get("_prepared", False)):
        params = prepare_params(params, weight_dtype=weight_dtype)

    h = jnp.asarray(h)
    out_dtype = h.dtype
    h = h.astype(jnp.float32)
    B, H = h.shape
    assert H == params["hidden_size"], "hidden size mismatch with params"
    H_pad = params["hidden_pad"]
    B_pad = _round_up(max(B, 8), 8)
    has_x = x is not None

    inv_tau = params["inv_tau"]

    def pad2(a):
        return jnp.pad(a, ((0, B_pad - a.shape[0]), (0, H_pad - a.shape[1])))

    lhs_p = pad2(jnp.tanh(h))                      # [B_pad, H_pad] f32 (hoisted tanh)
    neg_h_p = pad2(-h * inv_tau[None, :])          # [B_pad, H_pad] f32 (1/tau folded)
    if has_x:
        x_p = pad2(jnp.asarray(x, jnp.float32))

    w_hh_t = params["w_hh_t"]
    w_ih_t = params["w_ih_t"]
    bias_scaled = params["bias_scaled"]
    wdt = params["weight_dtype"]
    wbytes = wdt.itemsize
    out_itemsize = jnp.dtype(out_dtype).itemsize
    n_w = 2 if has_x else 1

    # --- generation-aware VMEM budget & tile choice -------------------------
    cap = _vmem_capacity_bytes()
    vmem_limit = 48 * _MIB if cap <= 64 * _MIB else 100 * _MIB
    budget = int(0.9 * vmem_limit)
    num_tc = _num_tensorcores()

    def footprint(tn):
        # Conservative: resident activations double-buffered (fallback path),
        # all tiled streams double-buffered.
        resident = (1 + int(has_x)) * B_pad * H_pad * 4 * 2
        per_tile = (n_w * H_pad * tn * wbytes       # weight tiles (K = H_pad)
                    + B_pad * tn * 4                # -h/tau tile
                    + 8 * tn * 4                    # bias tile (>=8 sublanes)
                    + B_pad * tn * out_itemsize)    # output tile
        return resident + 2 * per_tile

    candidates = [tn for tn in (2048, 1024, 512, 256, 128)
                  if tn <= H_pad and H_pad % tn == 0]
    feasible = [tn for tn in candidates if footprint(tn) <= budget]
    if not feasible:
        tn = 128  # best effort; huge B/H would need batch tiling (see TODO)
    else:
        tn = max(feasible)
        if num_tc >= 2:
            balanced = [c for c in feasible
                        if (H_pad // c) >= num_tc and (H_pad // c) % num_tc == 0]
            if balanced:
                tn = max(balanced)
    grid_n = H_pad // tn

    # --- specs & call --------------------------------------------------------
    if has_x:
        kernel = _liquid_ode_kernel
        args = (lhs_p, x_p, w_hh_t, w_ih_t, neg_h_p, bias_scaled)
    else:
        kernel = _liquid_ode_kernel_no_input
        args = (lhs_p, w_hh_t, neg_h_p, bias_scaled)

    def run(single_buffer_resident):
        def resident_spec():
            if single_buffer_resident:
                # index_map is constant -> a second buffer is pure VMEM waste.
                return pl.BlockSpec((B_pad, H_pad), lambda j: (0, 0),
                                    pipeline_mode=pl.Buffered(1))
            return pl.BlockSpec((B_pad, H_pad), lambda j: (0, 0))

        w_spec = pl.BlockSpec((H_pad, tn), lambda j: (0, j))
        tile_spec = pl.BlockSpec((B_pad, tn), lambda j: (0, j))
        vec_spec = pl.BlockSpec((1, tn), lambda j: (0, j))

        if has_x:
            in_specs = [resident_spec(), resident_spec(), w_spec, w_spec,
                        tile_spec, vec_spec]
        else:
            in_specs = [resident_spec(), w_spec, tile_spec, vec_spec]

        return pl.pallas_call(
            kernel,
            out_shape=jax.ShapeDtypeStruct((B_pad, H_pad), out_dtype),
            grid=(grid_n,),
            in_specs=in_specs,
            out_specs=tile_spec,
            compiler_params=pltpu.CompilerParams(
                dimension_semantics=("parallel",),
                vmem_limit_bytes=int(vmem_limit),
            ),
        )(*args)

    try:
        out = run(True)          # single-buffered resident inputs
    except Exception:
        out = run(False)         # fallback: default double buffering

    return out[:B, :H]


def init_params(key, hidden_size):
    """Deterministic parameter init matching the PyTorch __init__."""
    k1, k2 = jax.random.split(key)
    return {
        "W_hh": jax.random.normal(k1, (hidden_size, hidden_size), jnp.float32) * 0.01,
        "W_ih": jax.random.normal(k2, (hidden_size, hidden_size), jnp.float32) * 0.01,
        "bias": jnp.zeros((hidden_size,), jnp.float32),
        "tau": jnp.ones((hidden_size,), jnp.float32),
    }


def _reference(t, h, params, x=None):
    """Pure-JAX reference mirroring the PyTorch forward, for verification."""
    input_effect = 0.0 if x is None else x @ params["W_ih"].T
    hidden_effect = jnp.tanh(h) @ params["W_hh"].T
    return (-h + hidden_effect + input_effect + params["bias"]) / params["tau"]


if __name__ == "__main__":
    batch, hidden = 2, 32
    key = jax.random.PRNGKey(0)
    kp, kh, kx = jax.random.split(key, 3)

    params = init_params(kp, hidden)
    h = jax.random.normal(kh, (batch, hidden), jnp.float32)
    x = jax.random.normal(kx, (batch, hidden), jnp.float32)
    t = jnp.float32(0.0)

    # Prepare weights ONCE (f32 and bf16 variants) and reuse across calls.
    prepared_f32 = prepare_params(params, weight_dtype=jnp.float32)
    prepared_bf16 = prepare_params(params)  # default: bfloat16 weights

    # With input set (self.input = x), f32 weights: tight tolerance.
    out = jax.block_until_ready(liquid_ode_func(t, h, prepared_f32, x=x))
    ref = _reference(t, h, params, x=x)
    assert out.shape == (batch, hidden) and out.dtype == jnp.float32
    assert jnp.allclose(out, ref, atol=1e-5, rtol=1e-5)

    # Without input (self.input is None branch), f32 weights.
    out_ni = jax.block_until_ready(liquid_ode_func(t, h, prepared_f32, x=None))
    ref_ni = _reference(t, h, params, x=None)
    assert jnp.allclose(out_ni, ref_ni, atol=1e-5, rtol=1e-5)

    # bf16-weight fast path (f32 activations + accumulation): relaxed tolerance.
    out_bf = jax.block_until_ready(liquid_ode_func(t, h, prepared_bf16, x=x))
    assert jnp.allclose(out_bf, ref, atol=2e-2, rtol=2e-2)

    # Raw-params convenience path (prepares internally) still works.
    out_raw = jax.block_until_ready(
        liquid_ode_func(t, h, params, x=x, weight_dtype=jnp.float32))
    assert jnp.allclose(out_raw, ref, atol=1e-5, rtol=1e-5)

    print("KERNEL_OK")
</pallas_src>

<mosaic_0001>
module attributes {stable_mosaic.version = 11 : i64} {
  func.func @_liquid_ode_kernel(%arg0: i32, %arg1: memref<8x128xf32, #tpu.memory_space<vmem>>, %arg2: memref<8x128xf32, #tpu.memory_space<vmem>>, %arg3: memref<128x128xf32, #tpu.memory_space<vmem>>, %arg4: memref<128x128xf32, #tpu.memory_space<vmem>>, %arg5: memref<8x128xf32, #tpu.memory_space<vmem>>, %arg6: memref<1x128xf32, #tpu.memory_space<vmem>>, %arg7: memref<8x128xf32, #tpu.memory_space<vmem>>) attributes {dimension_semantics = [#tpu.dimension_semantics<parallel>], iteration_bounds = array<i64: 1>, scalar_prefetch = 0 : i64, scratch_operands = 0 : i64, tpu.core_type = #tpu.core_type<tc>, window_params = [{pipeline_mode = #tpu.pipeline_mode<synchronous>, transform_indices = @transform_0, window_bounds = array<i64: 8, 128>}, {pipeline_mode = #tpu.pipeline_mode<synchronous>, transform_indices = @transform_1, window_bounds = array<i64: 8, 128>}, {transform_indices = @transform_2, window_bounds = array<i64: 128, 128>}, {transform_indices = @transform_3, window_bounds = array<i64: 128, 128>}, {transform_indices = @transform_4, window_bounds = array<i64: 8, 128>}, {transform_indices = @transform_5, window_bounds = array<i64: 1, 128>}, {transform_indices = @transform_6, window_bounds = array<i64: 8, 128>}]} {
    %c0 = arith.constant 0 : index
    %c0_0 = arith.constant 0 : index
    %0 = vector.load %arg1[%c0, %c0_0] : memref<8x128xf32, #tpu.memory_space<vmem>>, vector<8x128xf32>
    %c0_1 = arith.constant 0 : index
    %c0_2 = arith.constant 0 : index
    %1 = vector.load %arg3[%c0_1, %c0_2] : memref<128x128xf32, #tpu.memory_space<vmem>>, vector<128x128xf32>
    %cst = arith.constant dense<0.000000e+00> : vector<8x128xf32>
    %2 = tpu.matmul %0, %1, %cst {dimension_numbers = #tpu.dot_dimension_numbers<[1], [0], [0], [1], [0, 0, 1, 1], [], []>} : vector<8x128xf32>, vector<128x128xf32>, vector<8x128xf32> -> vector<8x128xf32>
    %c0_3 = arith.constant 0 : index
    %c0_4 = arith.constant 0 : index
    %3 = vector.load %arg2[%c0_3, %c0_4] : memref<8x128xf32, #tpu.memory_space<vmem>>, vector<8x128xf32>
    %c0_5 = arith.constant 0 : index
    %c0_6 = arith.constant 0 : index
    %4 = vector.load %arg4[%c0_5, %c0_6] : memref<128x128xf32, #tpu.memory_space<vmem>>, vector<128x128xf32>
    %cst_7 = arith.constant dense<0.000000e+00> : vector<8x128xf32>
    %5 = tpu.matmul %3, %4, %cst_7 {dimension_numbers = #tpu.dot_dimension_numbers<[1], [0], [0], [1], [0, 0, 1, 1], [], []>} : vector<8x128xf32>, vector<128x128xf32>, vector<8x128xf32> -> vector<8x128xf32>
    %6 = arith.addf %2, %5 : vector<8x128xf32>
    %c0_8 = arith.constant 0 : index
    %c0_9 = arith.constant 0 : index
    %7 = vector.load %arg5[%c0_8, %c0_9] : memref<8x128xf32, #tpu.memory_space<vmem>>, vector<8x128xf32>
    %8 = arith.addf %6, %7 : vector<8x128xf32>
    %c0_10 = arith.constant 0 : index
    %c0_11 = arith.constant 0 : index
    %9 = vector.load %arg6[%c0_10, %c0_11] : memref<1x128xf32, #tpu.memory_space<vmem>>, vector<1x128xf32>
    %10 = vector.broadcast %9 : vector<1x128xf32> to vector<8x128xf32>
    %11 = arith.addf %8, %10 : vector<8x128xf32>
    %c0_12 = arith.constant 0 : index
    %c0_13 = arith.constant 0 : index
    %12 = vector.load %arg7[%c0_12, %c0_13] : memref<8x128xf32, #tpu.memory_space<vmem>>, vector<8x128xf32>
    tpu.vector_store %arg7[%c0_12, %c0_13], %11 {strides = array<i32>} : memref<8x128xf32, #tpu.memory_space<vmem>>, vector<8x128xf32>,
    return
  }
  func.func @transform_0(%arg0: i32) -> (i32, i32) {
    %c0_i32 = arith.constant 0 : i32
    %c0_i32_0 = arith.constant 0 : i32
    %c0_i32_1 = arith.constant 0 : i32
    return %c0_i32, %c0_i32_0 : i32, i32
  }
  func.func @transform_1(%arg0: i32) -> (i32, i32) {
    %c0_i32 = arith.constant 0 : i32
    %c0_i32_0 = arith.constant 0 : i32
    %c0_i32_1 = arith.constant 0 : i32
    return %c0_i32, %c0_i32_0 : i32, i32
  }
  func.func @transform_2(%arg0: i32) -> (i32, i32) {
    %c0_i32 = arith.constant 0 : i32
    %c0_i32_0 = arith.constant 0 : i32
    return %c0_i32, %arg0 : i32, i32
  }
  func.func @transform_3(%arg0: i32) -> (i32, i32) {
    %c0_i32 = arith.constant 0 : i32
    %c0_i32_0 = arith.constant 0 : i32
    return %c0_i32, %arg0 : i32, i32
  }
  func.func @transform_4(%arg0: i32) -> (i32, i32) {
    %c0_i32 = arith.constant 0 : i32
    %c0_i32_0 = arith.constant 0 : i32
    return %c0_i32, %arg0 : i32, i32
  }
  func.func @transform_5(%arg0: i32) -> (i32, i32) {
    %c0_i32 = arith.constant 0 : i32
    %c0_i32_0 = arith.constant 0 : i32
    return %c0_i32, %arg0 : i32, i32
  }
  func.func @transform_6(%arg0: i32) -> (i32, i32) {
    %c0_i32 = arith.constant 0 : i32
    %c0_i32_0 = arith.constant 0 : i32
    return %c0_i32, %arg0 : i32, i32
  }
}

module attributes {stable_mosaic.version = 11 : i64} {
  func.func @_liquid_ode_kernel(%arg0: i32, %arg1: memref<8x128xf32, #tpu.memory_space<vmem>>, %arg2: memref<8x128xf32, #tpu.memory_space<vmem>>, %arg3: memref<128x128xf32, #tpu.memory_space<vmem>>, %arg4: memref<128x128xf32, #tpu.memory_space<vmem>>, %arg5: memref<8x128xf32, #tpu.memory_space<vmem>>, %arg6: memref<1x128xf32, #tpu.memory_space<vmem>>, %arg7: memref<8x128xf32, #tpu.memory_space<vmem>>) attributes {dimension_semantics = [#tpu.dimension_semantics<parallel>], iteration_bounds = array<i64: 1>, scalar_prefetch = 0 : i64, scratch_operands = 0 : i64, tpu.core_type = #tpu.core_type<tc>, window_params = [{pipeline_mode = #tpu.pipeline_mode<synchronous>, transform_indices = @transform_0, window_bounds = array<i64: 8, 128>}, {pipeline_mode = #tpu.pipeline_mode<synchronous>, transform_indices = @transform_1, window_bounds = array<i64: 8, 128>}, {transform_indices = @transform_2, window_bounds = array<i64: 128, 128>}, {transform_indices = @transform_3, window_bounds = array<i64: 128, 128>}, {transform_indices = @transform_4, window_bounds = array<i64: 8, 128>}, {transform_indices = @transform_5, window_bounds = array<i64: 1, 128>}, {transform_indices = @transform_6, window_bounds = array<i64: 8, 128>}]} {
    %c0 = arith.constant 0 : index
    %c0_0 = arith.constant 0 : index
    %0 = vector.load %arg1[%c0, %c0_0] : memref<8x128xf32, #tpu.memory_space<vmem>>, vector<8x128xf32>
    %c0_1 = arith.constant 0 : index
    %c0_2 = arith.constant 0 : index
    %1 = vector.load %arg3[%c0_1, %c0_2] : memref<128x128xf32, #tpu.memory_space<vmem>>, vector<128x128xf32>
    %cst = arith.constant dense<0.000000e+00> : vector<8x128xf32>
    %2 = tpu.matmul %0, %1, %cst {dimension_numbers = #tpu.dot_dimension_numbers<[1], [0], [0], [1], [0, 0, 1, 1], [], []>} : vector<8x128xf32>, vector<128x128xf32>, vector<8x128xf32> -> vector<8x128xf32>
    %c0_3 = arith.constant 0 : index
    %c0_4 = arith.constant 0 : index
    %3 = vector.load %arg2[%c0_3, %c0_4] : memref<8x128xf32, #tpu.memory_space<vmem>>, vector<8x128xf32>
    %c0_5 = arith.constant 0 : index
    %c0_6 = arith.constant 0 : index
    %4 = vector.load %arg4[%c0_5, %c0_6] : memref<128x128xf32, #tpu.memory_space<vmem>>, vector<128x128xf32>
    %cst_7 = arith.constant dense<0.000000e+00> : vector<8x128xf32>
    %5 = tpu.matmul %3, %4, %cst_7 {dimension_numbers = #tpu.dot_dimension_numbers<[1], [0], [0], [1], [0, 0, 1, 1], [], []>} : vector<8x128xf32>, vector<128x128xf32>, vector<8x128xf32> -> vector<8x128xf32>
    %6 = arith.addf %2, %5 : vector<8x128xf32>
    %c0_8 = arith.constant 0 : index
    %c0_9 = arith.constant 0 : index
    %7 = vector.load %arg5[%c0_8, %c0_9] : memref<8x128xf32, #tpu.memory_space<vmem>>, vector<8x128xf32>
    %8 = arith.addf %6, %7 : vector<8x128xf32>
    %c0_10 = arith.constant 0 : index
    %c0_11 = arith.constant 0 : index
    %9 = vector.load %arg6[%c0_10, %c0_11] : memref<1x128xf32, #tpu.memory_space<vmem>>, vector<1x128xf32>
    %10 = vector.broadcast %9 : vector<1x128xf32> to vector<8x128xf32>
    %11 = arith.addf %8, %10 : vector<8x128xf32>
    %c0_12 = arith.constant 0 : index
    %c0_13 = arith.constant 0 : index
    %12 = vector.load %arg7[%c0_12, %c0_13] : memref<8x128xf32, #tpu.memory_space<vmem>>, vector<8x128xf32>
    tpu.vector_store %arg7[%c0_12, %c0_13], %11 {strides = array<i32>} : memref<8x128xf32, #tpu.memory_space<vmem>>, vector<8x128xf32>,
    return
  }
  func.func @transform_0(%arg0: i32) -> (i32, i32) {
    %c0_i32 = arith.constant 0 : i32
    %c0_i32_0 = arith.constant 0 : i32
    %c0_i32_1 = arith.constant 0 : i32
    return %c0_i32, %c0_i32_0 : i32, i32
  }
  func.func @transform_1(%arg0: i32) -> (i32, i32) {
    %c0_i32 = arith.constant 0 : i32
    %c0_i32_0 = arith.constant 0 : i32
    %c0_i32_1 = arith.constant 0 : i32
    return %c0_i32, %c0_i32_0 : i32, i32
  }
  func.func @transform_2(%arg0: i32) -> (i32, i32) {
    %c0_i32 = arith.constant 0 : i32
    %c0_i32_0 = arith.constant 0 : i32
    return %c0_i32, %arg0 : i32, i32
  }
  func.func @transform_3(%arg0: i32) -> (i32, i32) {
    %c0_i32 = arith.constant 0 : i32
    %c0_i32_0 = arith.constant 0 : i32
    return %c0_i32, %arg0 : i32, i32
  }
  func.func @transform_4(%arg0: i32) -> (i32, i32) {
    %c0_i32 = arith.constant 0 : i32
    %c0_i32_0 = arith.constant 0 : i32
    return %c0_i32, %arg0 : i32, i32
  }
  func.func @transform_5(%arg0: i32) -> (i32, i32) {
    %c0_i32 = arith.constant 0 : i32
    %c0_i32_0 = arith.constant 0 : i32
    return %c0_i32, %arg0 : i32, i32
  }
  func.func @transform_6(%arg0: i32) -> (i32, i32) {
    %c0_i32 = arith.constant 0 : i32
    %c0_i32_0 = arith.constant 0 : i32
    return %c0_i32, %arg0 : i32, i32
  }
}

</mosaic_0001>

<bundles_post_ra>
// kernel: tpu_custom_call.1
= control target key start
LH: loop header
LB: loop body
LE: loop exit
PB: predicated region body
PF: predicated region fallthrough
CT: control target
= control target key end

     0   :  { %11 = vsyncpa [#allocation3], 0  ;;  %s685_s0 = inlined_call_operand.hbm [shape: f32[8,128], index: 0, kind: input, shape index: {}]   ;;  %s686_s1 = inlined_call_operand.hbm [shape: f32[8,128], index: 1, kind: input, shape index: {}]   ;;  %s687_s2 = inlined_call_operand.hbm [shape: f32[128,128], index: 2, kind: input, shape index: {}]   ;;  %s688_s3 = inlined_call_operand.hbm [shape: f32[128,128], index: 3, kind: input, shape index: {}]   ;;  %s689_s4 = inlined_call_operand.vmem [shape: f32[8,128], index: 4, kind: input, shape index: {}]   ;;  %s690_s5 = inlined_call_operand.vmem [shape: f32[1,128], index: 5, kind: input, shape index: {}]   ;;  %s691_s6 = inlined_call_operand.hbm [shape: f32[8,128], index: 6, kind: output, shape index: {}]  }
   0x1   :  { %12 = vsyncpa [#allocation6], 0 }
   0x2   :  { %13 = vsyncpa [#allocation9], 0 }
   0x3   :  { %14 = vsyncpa [#allocation4], 0  ;;  %s558_s21 = smov [#allocation5]   ;;  %s559_s23 = smov [#allocation2]  }
   0x4   :  { %s31_s22 = sshll.u32 %s558_s21, 4  ;;  %s21_s24 = sshll.u32 %s559_s23, 4  ;;  %s32_s22 = int_to_ptr.vmem [resolvable:$true] %s31_s22  ;;  %s22_s24 = int_to_ptr.vmem [resolvable:$true] %s21_s24 }
   0x5   :  { %s440_s27 = scalar_lea.hbm %s686_s1, 128 }
   0x6   :  { %p441_p0 = scmp.ne.s32.totalorder %s686_s1, %s440_s27  ;;  %p444_p1 = scmp.lt.u32.totalorder %s440_s27, %s686_s1 }
   0x8   :  { %p446_p2 = pnand %p444_p1, %p441_p0 }
   0xa   :  { %449 = shalt.err (!%p446_p2)
}
   0xb   :  { %s450_s8 = scalar_lea.vmem %s32_s22, 128  ;;  %p455_p4 = scmp.lt.s32.totalorder %s32_s22, %s32_s22 }
   0xc   :  { %p451_p3 = scmp.ne.s32.totalorder %s32_s22, %s450_s8  ;;  %p456_p5 = scmp.lt.s32.totalorder %s450_s8, %s450_s8 }
   0xe   :  { %p457_p6 = por %p456_p5, %p455_p4 }
  0x10   :  { %p458_p7 = pnand %p457_p6, %p451_p3 }
  0x12   :  { %461 = shalt.err (!%p458_p7)
}
  0x13   :  { %34 = dma.hbm_to_vmem [thread:$0]  %s686_s1, 128, %s32_s22, [#allocation6]  }
  0x14   :  { %s462_s13 = scalar_lea.hbm %s685_s0, 128 }
  0x15   :  { %p463_p8 = scmp.ne.s32.totalorder %s685_s0, %s462_s13  ;;  %p466_p9 = scmp.lt.u32.totalorder %s462_s13, %s685_s0 }
  0x17   :  { %p468_p10 = pnand %p466_p9, %p463_p8 }
  0x19   :  { %471 = shalt.err (!%p468_p10)
}
  0x1a   :  { %s472_s18 = scalar_lea.vmem %s22_s24, 128  ;;  %p477_p12 = scmp.lt.s32.totalorder %s22_s24, %s22_s24 }
  0x1b   :  { %p473_p11 = scmp.ne.s32.totalorder %s22_s24, %s472_s18  ;;  %p478_p13 = scmp.lt.s32.totalorder %s472_s18, %s472_s18 }
  0x1d   :  { %p479_p0 = por %p478_p13, %p477_p12 }
  0x1f   :  { %p480_p1 = pnand %p479_p0, %p473_p11 }
  0x21   :  { %483 = shalt.err (!%p480_p1)
}
  0x22   :  { %24 = dma.hbm_to_vmem [thread:$0]  %s685_s0, 128, %s22_s24, [#allocation3]  }
  0x23   :  { %s560_s20 = smov [#allocation7]   ;;  %s484_s25 = scalar_lea.hbm %s687_s2, 2048 }
  0x24   :  { %s40_s21 = sshll.u32 %s560_s20, 4  ;;  %p485_p2 = scmp.ne.s32.totalorder %s687_s2, %s484_s25  ;;  %s41_s21 = int_to_ptr.vmem [resolvable:$true] %s40_s21 }
  0x25   :  { %p488_p3 = scmp.lt.u32.totalorder %s484_s25, %s687_s2 }
  0x27   :  { %p490_p4 = pnand %p488_p3, %p485_p2 }
  0x29   :  { %493 = shalt.err (!%p490_p4)
}
  0x2a   :  { %s494_s30 = scalar_lea.vmem %s41_s21, 2048  ;;  %p499_p6 = scmp.lt.s32.totalorder %s41_s21, %s41_s21 }
  0x2b   :  { %p495_p5 = scmp.ne.s32.totalorder %s41_s21, %s494_s30  ;;  %p500_p7 = scmp.lt.s32.totalorder %s494_s30, %s494_s30 }
  0x2d   :  { %p501_p8 = por %p500_p7, %p499_p6 }
  0x2f   :  { %p502_p9 = pnand %p501_p8, %p495_p5 }
  0x31   :  { %505 = shalt.err (!%p502_p9)
}
  0x32   :  { %s561_s0 = smov 128   ;;  %s562_s24 = smov 8  }
  0x33   :  { %46 = dma.hbm_to_vmem [thread:$0]  %s687_s2, 2048, %s41_s21, [#allocation6], %s561_s0, %s561_s0, %s562_s24  }
  0x34   :  { %s563_s9 = smov [#allocation8]   ;;  %s506_s13 = scalar_lea.hbm %s688_s3, 2048 }
  0x35   :  { %s52_s10 = sshll.u32 %s563_s9, 4  ;;  %p507_p10 = scmp.ne.s32.totalorder %s688_s3, %s506_s13  ;;  %s53_s10 = int_to_ptr.vmem [resolvable:$true] %s52_s10 }
  0x36   :  { %p510_p11 = scmp.lt.u32.totalorder %s506_s13, %s688_s3 }
  0x38   :  { %p512_p12 = pnand %p510_p11, %p507_p10 }
  0x3a   :  { %515 = shalt.err (!%p512_p12)
}
  0x3b   :  { %s516_s18 = scalar_lea.vmem %s53_s10, 2048  ;;  %p521_p0 = scmp.lt.s32.totalorder %s53_s10, %s53_s10 }
  0x3c   :  { %p517_p13 = scmp.ne.s32.totalorder %s53_s10, %s516_s18  ;;  %p522_p1 = scmp.lt.s32.totalorder %s516_s18, %s516_s18 }
  0x3e   :  { %p523_p2 = por %p522_p1, %p521_p0 }
  0x40   :  { %p524_p3 = pnand %p523_p2, %p517_p13 }
  0x42   :  { %527 = shalt.err (!%p524_p3)
}
  0x43   :  { %58 = dma.hbm_to_vmem [thread:$0]  %s688_s3, 2048, %s53_s10, [#allocation9], %s561_s0, %s561_s0, %s562_s24  }
  0x44   :  { %550 = dma.done.wait [#allocation3], 128  }
  0x45   :  { %551 = vsyncadd [#allocation3], 4294967168 }
  0x46   :  { %552 = dma.done.wait [#allocation6], 2176  }
  0x47   :  { %553 = vsyncadd [#allocation6], 4294965120 }
  0x48   :  { %554 = dma.done.wait [#allocation9], 2048  }
  0x49   :  { %555 = vsyncadd [#allocation9], 4294965248  ;;  %v564_v0 = vmov 0.0|0.0   ;;  %vm565_vm0 = vmmov 0   ;;  %v566_v1 = vmov 0.0   ;;  %v93_v2 = vld [vmem:[#allocation8] sm:$0xff] }
  0x4a   :  { %382 = vmatprep.subr.bf16.mxu0 %v564_v0  ;;  %406 = vmatprep.subr.bf16.mxu1 %v564_v0  ;;  %v94_v3 = vld [vmem:[#allocation8 + $0x8] sm:$0xff]  ;;  %v76_v4 = vld [vmem:[#allocation7] sm:$0xff]  ;;  %v95_v7 = vld [vmem:[#allocation8 + $0x10] sm:$0xff]  ;;  %s567_s22 = smov [#allocation10]  }
  0x4b   :  { %344 = vmatprep.mubr.msk.f32.mxu0 %vm565_vm0, %v566_v1  ;;  %379 = vmatprep.mubr.msk.f32.mxu1 %vm565_vm0, %v566_v1  ;;  %v383_v5 = vpack.c.bf16 %v94_v3, %v93_v2  ;;  %v77_v6 = vld [vmem:[#allocation7 + $0x8] sm:$0xff]  ;;  %v96_v8 = vld [vmem:[#allocation8 + $0x18] sm:$0xff]  ;;  %v78_v10 = vld [vmem:[#allocation7 + $0x10] sm:$0xff]  ;;  %s266_s23 = sshll.u32 %s567_s22, 4  ;;  %s267_s23 = int_to_ptr.vmem [resolvable:$true] %s266_s23 }
  0x4c   :  { %v407_v9 = vpack.c.bf16 %v77_v6, %v76_v4  ;;  %v79_v11 = vld [vmem:[#allocation7 + $0x18] sm:$0xff]  ;;  %v386_v12 = vpack.c.bf16 %v96_v8, %v95_v7  ;;  %v97_v14 = vld [vmem:[#allocation8 + $0x20] sm:$0xff]  ;;  %v98_v15 = vld [vmem:[#allocation8 + $0x28] sm:$0xff]  ;;  %s528_s25 = scalar_lea.vmem %s267_s23, 128  ;;  %p533_p5 = scmp.lt.s32.totalorder %s267_s23, %s267_s23 }
  0x4d   :  { %384 = vmatpush3.bf16.msra.mxu0 %v383_v5  ;;  %v410_v13 = vpack.c.bf16 %v79_v11, %v78_v10  ;;  %v80_v16 = vld [vmem:[#allocation7 + $0x20] sm:$0xff]  ;;  %v81_v17 = vld [vmem:[#allocation7 + $0x28] sm:$0xff]  ;;  %v389_v18 = vpack.c.bf16 %v98_v15, %v97_v14  ;;  %v99_v20 = vld [vmem:[#allocation8 + $0x30] sm:$0xff]  ;;  %p529_p4 = scmp.ne.s32.totalorder %s267_s23, %s528_s25  ;;  %p534_p6 = scmp.lt.s32.totalorder %s528_s25, %s528_s25 }
  0x4e   :  { %408 = vmatpush3.bf16.msra.mxu1 %v407_v9  ;;  %385 = vmatprep.subr.bf16.mxu0 %v564_v0  ;;  %v413_v19 = vpack.c.bf16 %v81_v17, %v80_v16  ;;  %v100_v21 = vld [vmem:[#allocation8 + $0x38] sm:$0xff]  ;;  %v82_v22 = vld [vmem:[#allocation7 + $0x30] sm:$0xff]  ;;  %v101_v26 = vld [vmem:[#allocation8 + $0x40] sm:$0xff] }
  0x4f   :  { %409 = vmatprep.subr.bf16.mxu1 %v564_v0  ;;  %v83_v23 = vld [vmem:[#allocation7 + $0x38] sm:$0xff]  ;;  %v392_v24 = vpack.c.bf16 %v100_v21, %v99_v20  ;;  %v102_v27 = vld [vmem:[#allocation8 + $0x48] sm:$0xff]  ;;  %v84_v28 = vld [vmem:[#allocation7 + $0x40] sm:$0xff]  ;;  %p535_p7 = por %p534_p6, %p533_p5 }
  0x50   :  { %v416_v25 = vpack.c.bf16 %v83_v23, %v82_v22  ;;  %v85_v29 = vld [vmem:[#allocation7 + $0x48] sm:$0xff]  ;;  %v395_v30 = vpack.c.bf16 %v102_v27, %v101_v26  ;;  %v103_v32 = vld [vmem:[#allocation8 + $0x50] sm:$0xff]  ;;  %v104_v33 = vld [vmem:[#allocation8 + $0x58] sm:$0xff] }
  0x51   :  { %387 = vmatpush3.bf16.msra.mxu0 %v386_v12  ;;  %v419_v31 = vpack.c.bf16 %v85_v29, %v84_v28  ;;  %v86_v34 = vld [vmem:[#allocation7 + $0x50] sm:$0xff]  ;;  %v87_v35 = vld [vmem:[#allocation7 + $0x58] sm:$0xff]  ;;  %v398_v36 = vpack.c.bf16 %v104_v33, %v103_v32  ;;  %v105_v38 = vld [vmem:[#allocation8 + $0x60] sm:$0xff]  ;;  %p536_p8 = pnand %p535_p7, %p529_p4 }
  0x52   :  { %411 = vmatpush3.bf16.msra.mxu1 %v410_v13  ;;  %388 = vmatprep.subr.bf16.mxu0 %v564_v0  ;;  %v422_v37 = vpack.c.bf16 %v87_v35, %v86_v34  ;;  %v106_v39 = vld [vmem:[#allocation8 + $0x68] sm:$0xff]  ;;  %v88_v40 = vld [vmem:[#allocation7 + $0x60] sm:$0xff]  ;;  %v107_v44 = vld [vmem:[#allocation8 + $0x70] sm:$0xff] }
  0x53   :  { %412 = vmatprep.subr.bf16.mxu1 %v564_v0  ;;  %v89_v41 = vld [vmem:[#allocation7 + $0x68] sm:$0xff]  ;;  %v401_v42 = vpack.c.bf16 %v106_v39, %v105_v38  ;;  %v108_v45 = vld [vmem:[#allocation8 + $0x78] sm:$0xff]  ;;  %v90_v46 = vld [vmem:[#allocation7 + $0x70] sm:$0xff] }
  0x54   :  { %v425_v43 = vpack.c.bf16 %v89_v41, %v88_v40  ;;  %v91_v47 = vld [vmem:[#allocation7 + $0x78] sm:$0xff]  ;;  %v404_v48 = vpack.c.bf16 %v108_v45, %v107_v44  ;;  %v75_v51 = vld [vmem:[#allocation2] sm:$0xff] }
  0x55   :  { %390 = vmatpush3.bf16.msra.mxu0 %v389_v18  ;;  %v428_v49 = vpack.c.bf16 %v91_v47, %v90_v46  ;;  %v92_v50 = vld [vmem:[#allocation5] sm:$0xff]  ;;  %v249_v54 = vld [vmem:[%s689_s4] sm:$0xff] }
  0x56   :  { %414 = vmatpush3.bf16.msra.mxu1 %v413_v19  ;;  %391 = vmatprep.subr.bf16.mxu0 %v564_v0  ;;  %v277_v58 = vld [vmem:[%s690_s5] ss:$0 sm:$0xff] }
  0x57   :  { %415 = vmatprep.subr.bf16.mxu1 %v564_v0 }
  0x59   :  { %393 = vmatpush3.bf16.msra.mxu0 %v392_v24 }
  0x5a   :  { %417 = vmatpush3.bf16.msra.mxu1 %v416_v25  ;;  %394 = vmatprep.subr.bf16.mxu0 %v564_v0 }
  0x5b   :  { %418 = vmatprep.subr.bf16.mxu1 %v564_v0 }
  0x5d   :  { %396 = vmatpush3.bf16.msra.mxu0 %v395_v30 }
  0x5e   :  { %420 = vmatpush3.bf16.msra.mxu1 %v419_v31  ;;  %397 = vmatprep.subr.bf16.mxu0 %v564_v0 }
  0x5f   :  { %421 = vmatprep.subr.bf16.mxu1 %v564_v0 }
  0x61   :  { %399 = vmatpush3.bf16.msra.mxu0 %v398_v36 }
  0x62   :  { %423 = vmatpush3.bf16.msra.mxu1 %v422_v37  ;;  %400 = vmatprep.subr.bf16.mxu0 %v564_v0 }
  0x63   :  { %424 = vmatprep.subr.bf16.mxu1 %v564_v0 }
  0x65   :  { %402 = vmatpush3.bf16.msra.mxu0 %v401_v42 }
  0x66   :  { %426 = vmatpush3.bf16.msra.mxu1 %v425_v43  ;;  %403 = vmatprep.subr.bf16.mxu0 %v564_v0 }
  0x67   :  { %427 = vmatprep.subr.bf16.mxu1 %v564_v0 }
  0x69   :  { %405 = vmatpush3.bf16.msra.mxu0 %v404_v48 }
  0x6a   :  { %429 = vmatpush3.bf16.msra.mxu1 %v428_v49 }
  0x6c   :  { %345 = vmatmul.mubr.f32.vlgmr.msra.gmra.mrb[0].mxu0 %v92_v50 }
  0x6d   :  { %380 = vmatmul.mubr.f32.vlgmr.msra.gmra.mrb[0].mxu1 %v75_v51 }
 0x13f   :  { %v175_v52 = vpop.f32.mrb[0].mxu0 }
 0x140   :  { %v245_v53 = vpop.f32.mrb[0].mxu1  ;;  %v346_v55 = vpop.f32.mrb[1].mxu0 }
 0x141   :  { %v246_v56 = vadd.f32 %v245_v53, %v175_v52  ;;  %v381_v57 = vpop.f32.mrb[1].mxu1 }
 0x143   :  { %v250_v59 = vadd.f32 %v249_v54, %v246_v56 }
 0x145   :  { %v258_v60 = vadd.f32 %v277_v58, %v250_v59 }
 0x147   :  { %259 = vst [vmem:[#allocation10] sm:$0xff] %v258_v60 }
 0x148   :  { %539 = shalt.err (!%p536_p8)
}
 0x149   :  { %s540_s27 = scalar_lea.hbm %s691_s6, 128 }
 0x14a   :  { %p541_p9 = scmp.ne.s32.totalorder %s691_s6, %s540_s27  ;;  %p544_p10 = scmp.lt.u32.totalorder %s540_s27, %s691_s6 }
 0x14c   :  { %p546_p11 = pnand %p544_p10, %p541_p9 }
 0x14e   :  { %549 = shalt.err (!%p546_p11)
}
 0x14f   :  { %269 = dma.vmem_to_hbm [thread:$0]  %s267_s23, 128, %s691_s6, [#allocation4]  }
 0x150   :  { %556 = dma.done.wait [#allocation4], 128  }
 0x151   :  { %557 = vsyncadd [#allocation4], 4294967168 }
 0x152   :  { %273 = vsyncpa [#allocation3], 1 }
 0x153   :  { %274 = vsyncpa [#allocation6], 1 }
 0x154   :  { %275 = vsyncpa [#allocation9], 1 }
 0x155   :  { %276 = vsyncpa [#allocation4], 1 }

// kernel: tpu_custom_call.1
= control target key start
LH: loop header
LB: loop body
LE: loop exit
PB: predicated region body
PF: predicated region fallthrough
CT: control target
= control target key end

     0   :  { %11 = vsyncpa [#allocation3], 0  ;;  %s685_s0 = inlined_call_operand.hbm [shape: f32[8,128], index: 0, kind: input, shape index: {}]   ;;  %s686_s1 = inlined_call_operand.hbm [shape: f32[8,128], index: 1, kind: input, shape index: {}]   ;;  %s687_s2 = inlined_call_operand.hbm [shape: f32[128,128], index: 2, kind: input, shape index: {}]   ;;  %s688_s3 = inlined_call_operand.hbm [shape: f32[128,128], index: 3, kind: input, shape index: {}]   ;;  %s689_s4 = inlined_call_operand.vmem [shape: f32[8,128], index: 4, kind: input, shape index: {}]   ;;  %s690_s5 = inlined_call_operand.vmem [shape: f32[1,128], index: 5, kind: input, shape index: {}]   ;;  %s691_s6 = inlined_call_operand.hbm [shape: f32[8,128], index: 6, kind: output, shape index: {}]  }
   0x1   :  { %12 = vsyncpa [#allocation6], 0 }
   0x2   :  { %13 = vsyncpa [#allocation9], 0 }
   0x3   :  { %14 = vsyncpa [#allocation4], 0  ;;  %s558_s21 = smov [#allocation5]   ;;  %s559_s23 = smov [#allocation2]  }
   0x4   :  { %s31_s22 = sshll.u32 %s558_s21, 4  ;;  %s21_s24 = sshll.u32 %s559_s23, 4  ;;  %s32_s22 = int_to_ptr.vmem [resolvable:$true] %s31_s22  ;;  %s22_s24 = int_to_ptr.vmem [resolvable:$true] %s21_s24 }
   0x5   :  { %s440_s27 = scalar_lea.hbm %s686_s1, 128 }
   0x6   :  { %p441_p0 = scmp.ne.s32.totalorder %s686_s1, %s440_s27  ;;  %p444_p1 = scmp.lt.u32.totalorder %s440_s27, %s686_s1 }
   0x8   :  { %p446_p2 = pnand %p444_p1, %p441_p0 }
   0xa   :  { %449 = shalt.err (!%p446_p2)
}
   0xb   :  { %s450_s8 = scalar_lea.vmem %s32_s22, 128  ;;  %p455_p4 = scmp.lt.s32.totalorder %s32_s22, %s32_s22 }
   0xc   :  { %p451_p3 = scmp.ne.s32.totalorder %s32_s22, %s450_s8  ;;  %p456_p5 = scmp.lt.s32.totalorder %s450_s8, %s450_s8 }
   0xe   :  { %p457_p6 = por %p456_p5, %p455_p4 }
  0x10   :  { %p458_p7 = pnand %p457_p6, %p451_p3 }
  0x12   :  { %461 = shalt.err (!%p458_p7)
}
  0x13   :  { %34 = dma.hbm_to_vmem [thread:$0]  %s686_s1, 128, %s32_s22, [#allocation6]  }
  0x14   :  { %s462_s13 = scalar_lea.hbm %s685_s0, 128 }
  0x15   :  { %p463_p8 = scmp.ne.s32.totalorder %s685_s0, %s462_s13  ;;  %p466_p9 = scmp.lt.u32.totalorder %s462_s13, %s685_s0 }
  0x17   :  { %p468_p10 = pnand %p466_p9, %p463_p8 }
  0x19   :  { %471 = shalt.err (!%p468_p10)
}
  0x1a   :  { %s472_s18 = scalar_lea.vmem %s22_s24, 128  ;;  %p477_p12 = scmp.lt.s32.totalorder %s22_s24, %s22_s24 }
  0x1b   :  { %p473_p11 = scmp.ne.s32.totalorder %s22_s24, %s472_s18  ;;  %p478_p13 = scmp.lt.s32.totalorder %s472_s18, %s472_s18 }
  0x1d   :  { %p479_p0 = por %p478_p13, %p477_p12 }
  0x1f   :  { %p480_p1 = pnand %p479_p0, %p473_p11 }
  0x21   :  { %483 = shalt.err (!%p480_p1)
}
  0x22   :  { %24 = dma.hbm_to_vmem [thread:$0]  %s685_s0, 128, %s22_s24, [#allocation3]  }
  0x23   :  { %s560_s20 = smov [#allocation7]   ;;  %s484_s25 = scalar_lea.hbm %s687_s2, 2048 }
  0x24   :  { %s40_s21 = sshll.u32 %s560_s20, 4  ;;  %p485_p2 = scmp.ne.s32.totalorder %s687_s2, %s484_s25  ;;  %s41_s21 = int_to_ptr.vmem [resolvable:$true] %s40_s21 }
  0x25   :  { %p488_p3 = scmp.lt.u32.totalorder %s484_s25, %s687_s2 }
  0x27   :  { %p490_p4 = pnand %p488_p3, %p485_p2 }
  0x29   :  { %493 = shalt.err (!%p490_p4)
}
  0x2a   :  { %s494_s30 = scalar_lea.vmem %s41_s21, 2048  ;;  %p499_p6 = scmp.lt.s32.totalorder %s41_s21, %s41_s21 }
  0x2b   :  { %p495_p5 = scmp.ne.s32.totalorder %s41_s21, %s494_s30  ;;  %p500_p7 = scmp.lt.s32.totalorder %s494_s30, %s494_s30 }
  0x2d   :  { %p501_p8 = por %p500_p7, %p499_p6 }
  0x2f   :  { %p502_p9 = pnand %p501_p8, %p495_p5 }
  0x31   :  { %505 = shalt.err (!%p502_p9)
}
  0x32   :  { %s561_s0 = smov 128   ;;  %s562_s24 = smov 8  }
  0x33   :  { %46 = dma.hbm_to_vmem [thread:$0]  %s687_s2, 2048, %s41_s21, [#allocation6], %s561_s0, %s561_s0, %s562_s24  }
  0x34   :  { %s563_s9 = smov [#allocation8]   ;;  %s506_s13 = scalar_lea.hbm %s688_s3, 2048 }
  0x35   :  { %s52_s10 = sshll.u32 %s563_s9, 4  ;;  %p507_p10 = scmp.ne.s32.totalorder %s688_s3, %s506_s13  ;;  %s53_s10 = int_to_ptr.vmem [resolvable:$true] %s52_s10 }
  0x36   :  { %p510_p11 = scmp.lt.u32.totalorder %s506_s13, %s688_s3 }
  0x38   :  { %p512_p12 = pnand %p510_p11, %p507_p10 }
  0x3a   :  { %515 = shalt.err (!%p512_p12)
}
  0x3b   :  { %s516_s18 = scalar_lea.vmem %s53_s10, 2048  ;;  %p521_p0 = scmp.lt.s32.totalorder %s53_s10, %s53_s10 }
  0x3c   :  { %p517_p13 = scmp.ne.s32.totalorder %s53_s10, %s516_s18  ;;  %p522_p1 = scmp.lt.s32.totalorder %s516_s18, %s516_s18 }
  0x3e   :  { %p523_p2 = por %p522_p1, %p521_p0 }
  0x40   :  { %p524_p3 = pnand %p523_p2, %p517_p13 }
  0x42   :  { %527 = shalt.err (!%p524_p3)
}
  0x43   :  { %58 = dma.hbm_to_vmem [thread:$0]  %s688_s3, 2048, %s53_s10, [#allocation9], %s561_s0, %s561_s0, %s562_s24  }
  0x44   :  { %550 = dma.done.wait [#allocation3], 128  }
  0x45   :  { %551 = vsyncadd [#allocation3], 4294967168 }
  0x46   :  { %552 = dma.done.wait [#allocation6], 2176  }
  0x47   :  { %553 = vsyncadd [#allocation6], 4294965120 }
  0x48   :  { %554 = dma.done.wait [#allocation9], 2048  }
  0x49   :  { %555 = vsyncadd [#allocation9], 4294965248  ;;  %v564_v0 = vmov 0.0|0.0   ;;  %vm565_vm0 = vmmov 0   ;;  %v566_v1 = vmov 0.0   ;;  %v93_v2 = vld [vmem:[#allocation8] sm:$0xff] }
  0x4a   :  { %382 = vmatprep.subr.bf16.mxu0 %v564_v0  ;;  %406 = vmatprep.subr.bf16.mxu1 %v564_v0  ;;  %v94_v3 = vld [vmem:[#allocation8 + $0x8] sm:$0xff]  ;;  %v76_v4 = vld [vmem:[#allocation7] sm:$0xff]  ;;  %v95_v7 = vld [vmem:[#allocation8 + $0x10] sm:$0xff]  ;;  %s567_s22 = smov [#allocation10]  }
  0x4b   :  { %344 = vmatprep.mubr.msk.f32.mxu0 %vm565_vm0, %v566_v1  ;;  %379 = vmatprep.mubr.msk.f32.mxu1 %vm565_vm0, %v566_v1  ;;  %v383_v5 = vpack.c.bf16 %v94_v3, %v93_v2  ;;  %v77_v6 = vld [vmem:[#allocation7 + $0x8] sm:$0xff]  ;;  %v96_v8 = vld [vmem:[#allocation8 + $0x18] sm:$0xff]  ;;  %v78_v10 = vld [vmem:[#allocation7 + $0x10] sm:$0xff]  ;;  %s266_s23 = sshll.u32 %s567_s22, 4  ;;  %s267_s23 = int_to_ptr.vmem [resolvable:$true] %s266_s23 }
  0x4c   :  { %v407_v9 = vpack.c.bf16 %v77_v6, %v76_v4  ;;  %v79_v11 = vld [vmem:[#allocation7 + $0x18] sm:$0xff]  ;;  %v386_v12 = vpack.c.bf16 %v96_v8, %v95_v7  ;;  %v97_v14 = vld [vmem:[#allocation8 + $0x20] sm:$0xff]  ;;  %v98_v15 = vld [vmem:[#allocation8 + $0x28] sm:$0xff]  ;;  %s528_s25 = scalar_lea.vmem %s267_s23, 128  ;;  %p533_p5 = scmp.lt.s32.totalorder %s267_s23, %s267_s23 }
  0x4d   :  { %384 = vmatpush3.bf16.msra.mxu0 %v383_v5  ;;  %v410_v13 = vpack.c.bf16 %v79_v11, %v78_v10  ;;  %v80_v16 = vld [vmem:[#allocation7 + $0x20] sm:$0xff]  ;;  %v81_v17 = vld [vmem:[#allocation7 + $0x28] sm:$0xff]  ;;  %v389_v18 = vpack.c.bf16 %v98_v15, %v97_v14  ;;  %v99_v20 = vld [vmem:[#allocation8 + $0x30] sm:$0xff]  ;;  %p529_p4 = scmp.ne.s32.totalorder %s267_s23, %s528_s25  ;;  %p534_p6 = scmp.lt.s32.totalorder %s528_s25, %s528_s25 }
  0x4e   :  { %408 = vmatpush3.bf16.msra.mxu1 %v407_v9  ;;  %385 = vmatprep.subr.bf16.mxu0 %v564_v0  ;;  %v413_v19 = vpack.c.bf16 %v81_v17, %v80_v16  ;;  %v100_v21 = vld [vmem:[#allocation8 + $0x38] sm:$0xff]  ;;  %v82_v22 = vld [vmem:[#allocation7 + $0x30] sm:$0xff]  ;;  %v101_v26 = vld [vmem:[#allocation8 + $0x40] sm:$0xff] }
  0x4f   :  { %409 = vmatprep.subr.bf16.mxu1 %v564_v0  ;;  %v83_v23 = vld [vmem:[#allocation7 + $0x38] sm:$0xff]  ;;  %v392_v24 = vpack.c.bf16 %v100_v21, %v99_v20  ;;  %v102_v27 = vld [vmem:[#allocation8 + $0x48] sm:$0xff]  ;;  %v84_v28 = vld [vmem:[#allocation7 + $0x40] sm:$0xff]  ;;  %p535_p7 = por %p534_p6, %p533_p5 }
  0x50   :  { %v416_v25 = vpack.c.bf16 %v83_v23, %v82_v22  ;;  %v85_v29 = vld [vmem:[#allocation7 + $0x48] sm:$0xff]  ;;  %v395_v30 = vpack.c.bf16 %v102_v27, %v101_v26  ;;  %v103_v32 = vld [vmem:[#allocation8 + $0x50] sm:$0xff]  ;;  %v104_v33 = vld [vmem:[#allocation8 + $0x58] sm:$0xff] }
  0x51   :  { %387 = vmatpush3.bf16.msra.mxu0 %v386_v12  ;;  %v419_v31 = vpack.c.bf16 %v85_v29, %v84_v28  ;;  %v86_v34 = vld [vmem:[#allocation7 + $0x50] sm:$0xff]  ;;  %v87_v35 = vld [vmem:[#allocation7 + $0x58] sm:$0xff]  ;;  %v398_v36 = vpack.c.bf16 %v104_v33, %v103_v32  ;;  %v105_v38 = vld [vmem:[#allocation8 + $0x60] sm:$0xff]  ;;  %p536_p8 = pnand %p535_p7, %p529_p4 }
  0x52   :  { %411 = vmatpush3.bf16.msra.mxu1 %v410_v13  ;;  %388 = vmatprep.subr.bf16.mxu0 %v564_v0  ;;  %v422_v37 = vpack.c.bf16 %v87_v35, %v86_v34  ;;  %v106_v39 = vld [vmem:[#allocation8 + $0x68] sm:$0xff]  ;;  %v88_v40 = vld [vmem:[#allocation7 + $0x60] sm:$0xff]  ;;  %v107_v44 = vld [vmem:[#allocation8 + $0x70] sm:$0xff] }
  0x53   :  { %412 = vmatprep.subr.bf16.mxu1 %v564_v0  ;;  %v89_v41 = vld [vmem:[#allocation7 + $0x68] sm:$0xff]  ;;  %v401_v42 = vpack.c.bf16 %v106_v39, %v105_v38  ;;  %v108_v45 = vld [vmem:[#allocation8 + $0x78] sm:$0xff]  ;;  %v90_v46 = vld [vmem:[#allocation7 + $0x70] sm:$0xff] }
  0x54   :  { %v425_v43 = vpack.c.bf16 %v89_v41, %v88_v40  ;;  %v91_v47 = vld [vmem:[#allocation7 + $0x78] sm:$0xff]  ;;  %v404_v48 = vpack.c.bf16 %v108_v45, %v107_v44  ;;  %v75_v51 = vld [vmem:[#allocation2] sm:$0xff] }
  0x55   :  { %390 = vmatpush3.bf16.msra.mxu0 %v389_v18  ;;  %v428_v49 = vpack.c.bf16 %v91_v47, %v90_v46  ;;  %v92_v50 = vld [vmem:[#allocation5] sm:$0xff]  ;;  %v249_v54 = vld [vmem:[%s689_s4] sm:$0xff] }
  0x56   :  { %414 = vmatpush3.bf16.msra.mxu1 %v413_v19  ;;  %391 = vmatprep.subr.bf16.mxu0 %v564_v0  ;;  %v277_v58 = vld [vmem:[%s690_s5] ss:$0 sm:$0xff] }
  0x57   :  { %415 = vmatprep.subr.bf16.mxu1 %v564_v0 }
  0x59   :  { %393 = vmatpush3.bf16.msra.mxu0 %v392_v24 }
  0x5a   :  { %417 = vmatpush3.bf16.msra.mxu1 %v416_v25  ;;  %394 = vmatprep.subr.bf16.mxu0 %v564_v0 }
  0x5b   :  { %418 = vmatprep.subr.bf16.mxu1 %v564_v0 }
  0x5d   :  { %396 = vmatpush3.bf16.msra.mxu0 %v395_v30 }
  0x5e   :  { %420 = vmatpush3.bf16.msra.mxu1 %v419_v31  ;;  %397 = vmatprep.subr.bf16.mxu0 %v564_v0 }
  0x5f   :  { %421 = vmatprep.subr.bf16.mxu1 %v564_v0 }
  0x61   :  { %399 = vmatpush3.bf16.msra.mxu0 %v398_v36 }
  0x62   :  { %423 = vmatpush3.bf16.msra.mxu1 %v422_v37  ;;  %400 = vmatprep.subr.bf16.mxu0 %v564_v0 }
  0x63   :  { %424 = vmatprep.subr.bf16.mxu1 %v564_v0 }
  0x65   :  { %402 = vmatpush3.bf16.msra.mxu0 %v401_v42 }
  0x66   :  { %426 = vmatpush3.bf16.msra.mxu1 %v425_v43  ;;  %403 = vmatprep.subr.bf16.mxu0 %v564_v0 }
  0x67   :  { %427 = vmatprep.subr.bf16.mxu1 %v564_v0 }
  0x69   :  { %405 = vmatpush3.bf16.msra.mxu0 %v404_v48 }
  0x6a   :  { %429 = vmatpush3.bf16.msra.mxu1 %v428_v49 }
  0x6c   :  { %345 = vmatmul.mubr.f32.vlgmr.msra.gmra.mrb[0].mxu0 %v92_v50 }
  0x6d   :  { %380 = vmatmul.mubr.f32.vlgmr.msra.gmra.mrb[0].mxu1 %v75_v51 }
 0x13f   :  { %v175_v52 = vpop.f32.mrb[0].mxu0 }
 0x140   :  { %v245_v53 = vpop.f32.mrb[0].mxu1  ;;  %v346_v55 = vpop.f32.mrb[1].mxu0 }
 0x141   :  { %v246_v56 = vadd.f32 %v245_v53, %v175_v52  ;;  %v381_v57 = vpop.f32.mrb[1].mxu1 }
 0x143   :  { %v250_v59 = vadd.f32 %v249_v54, %v246_v56 }
 0x145   :  { %v258_v60 = vadd.f32 %v277_v58, %v250_v59 }
 0x147   :  { %259 = vst [vmem:[#allocation10] sm:$0xff] %v258_v60 }
 0x148   :  { %539 = shalt.err (!%p536_p8)
}
 0x149   :  { %s540_s27 = scalar_lea.hbm %s691_s6, 128 }
 0x14a   :  { %p541_p9 = scmp.ne.s32.totalorder %s691_s6, %s540_s27  ;;  %p544_p10 = scmp.lt.u32.totalorder %s540_s27, %s691_s6 }
 0x14c   :  { %p546_p11 = pnand %p544_p10, %p541_p9 }
 0x14e   :  { %549 = shalt.err (!%p546_p11)
}
 0x14f   :  { %269 = dma.vmem_to_hbm [thread:$0]  %s267_s23, 128, %s691_s6, [#allocation4]  }
 0x150   :  { %556 = dma.done.wait [#allocation4], 128  }
 0x151   :  { %557 = vsyncadd [#allocation4], 4294967168 }
 0x152   :  { %273 = vsyncpa [#allocation3], 1 }
 0x153   :  { %274 = vsyncpa [#allocation6], 1 }
 0x154   :  { %275 = vsyncpa [#allocation9], 1 }
 0x155   :  { %276 = vsyncpa [#allocation4], 1 }

</bundles_post_ra>
